<compile_context>
chip_gen: v5e
topology: v5e:2x2
jax: 0.10.0
libtpu: 0.0.40
codegen_flags: <defaults>
</compile_context>

<pallas_src>
import jax
import jax.numpy as jnp
from jax import lax
from jax.experimental import pallas as pl
from jax.experimental.pallas import tpu as pltpu


def _sa_kernel(off_ref, lo_ref, hi_ref,          # scalar-prefetch tables (SMEM)
               feat_ref,                         # (F_pad, tile_n) packed point tile
               w1_ref, w2_ref, b2_ref,           # resident weights
               out_ref):                         # (c_out, B) resident partial max
    """One grid step: shared MLP over a lane-dense point tile + segment max."""
    split = pl.program_id(0)
    step = pl.program_id(1)
    tile = split * pl.num_programs(1) + step     # flat tile index into lo/hi tables
    tile_n = feat_ref.shape[1]
    c_out, num_batches = out_ref.shape

    # Initialize this split's partial-max accumulator on its first tile.
    @pl.when(step == 0)
    def _():
        out_ref[...] = jnp.full(out_ref.shape, -jnp.inf, out_ref.dtype)

    # Shared MLP in transposed orientation (points on lanes).  b1 is already
    # folded into w1 via the constant-1 feature row; accumulate in f32.
    h = jnp.dot(w1_ref[...], feat_ref[...], preferred_element_type=jnp.float32)
    h = jnp.maximum(h, 0.0)                                        # (hidden, tile_n) f32
    h = jnp.dot(w2_ref[...], h.astype(w2_ref.dtype),
                preferred_element_type=jnp.float32)
    h = jnp.maximum(h + b2_ref[...], 0.0)                          # (c_out, tile_n) f32

    neg = jnp.float32(-jnp.inf)
    # Global column (point) index of each lane in this tile.
    gcol = tile * tile_n + lax.broadcasted_iota(jnp.int32, (1, tile_n), 1)
    bcol = lax.broadcasted_iota(jnp.int32, (c_out, num_batches), 1)

    lo = lo_ref[tile]                     # first segment id touched by this tile
    hi = hi_ref[tile]                     # last segment id touched by this tile

    def seg_update(b, acc):
        # Segment membership from SMEM offsets — no per-point batch-id stream.
        in_seg = (gcol >= off_ref[b]) & (gcol < off_ref[b + 1])            # (1, tile_n)
        m = jnp.max(jnp.where(in_seg, h, neg), axis=1, keepdims=True)      # (c_out, 1)
        return jnp.where(bcol == b, jnp.maximum(acc, m), acc)

    acc = out_ref[...]
    acc = seg_update(lo, acc)             # static fast path: first segment
    acc = seg_update(hi, acc)             # static fast path: last segment (idempotent if hi==lo)
    # Rare slow path: tiles spanning >2 point clouds (tiny clouds vs tile_n).
    acc = lax.fori_loop(lo + 1, hi, seg_update, acc)
    out_ref[...] = acc                    # single full-block VMEM store per tile


def _default_num_splits():
    """One grid split per TensorCore sharing the kernel: 2 on megacore / v7x parts."""
    try:
        kind = jax.devices()[0].device_kind.lower()
    except Exception:
        return 1
    if any(tag in kind for tag in ("v4", "v5p", "7x", "tpu7")):
        return 2
    return 1


def pointnet2_global_sa(x, pos, batch, params, num_batches, *,
                        tile_n=None, num_splits=None,
                        compute_dtype=jnp.bfloat16):
    """JAX/Pallas equivalent of PointNet2GlobalSAModule.forward.

    Precondition: `batch` is sorted ascending with values in [0, num_batches)
    (standard PyG layout).  Returns (x1 [B, C_out] f32, pos1 [B, 3], batch1 [B]).
    Empty point clouds yield 0 rows (torch_scatter value-initialized fill).
    """
    pos = jnp.asarray(pos)
    n_points = pos.shape[0]
    if num_splits is None:
        num_splits = _default_num_splits()

    w1 = jnp.asarray(params["w1"], jnp.float32)        # (C_in+3, hidden) or (3, hidden)
    b1 = jnp.asarray(params["b1"], jnp.float32)        # (hidden,)
    w2 = jnp.asarray(params["w2"], jnp.float32)        # (hidden, c_out)
    b2 = jnp.asarray(params["b2"], jnp.float32)        # (c_out,)
    hidden, c_out = w2.shape

    # ---- Packed, feature-major point stream: rows = [x | pos | 1], lanes = points.
    rows = []
    if x is not None:
        rows.append(jnp.asarray(x).astype(compute_dtype).T)       # (C_in, N)
    rows.append(pos.astype(compute_dtype).T)                       # (3, N)
    rows.append(jnp.ones((1, n_points), compute_dtype))            # constant-1 bias row
    featT = jnp.concatenate(rows, axis=0)                          # (F, N)
    n_feat = featT.shape[0]                                        # C_in + 4 (or 4)
    f_rows = ((n_feat + 7) // 8) * 8                               # sublane-friendly

    # W1ᵀ with b1 folded onto the constant-1 row (zero-padded to f_rows columns).
    w1t = jnp.zeros((hidden, f_rows), jnp.float32)
    w1t = w1t.at[:, :n_feat - 1].set(w1.T).at[:, n_feat - 1].set(b1)
    w1t = w1t.astype(compute_dtype)
    w2t = w2.T.astype(compute_dtype)                               # (c_out, hidden)
    b2c = b2.reshape(c_out, 1)                                     # f32 epilogue bias

    # ---- Tile size: large DMA tiles, bounded by the f32 activation footprint so
    # the kernel stays inside v7x's 64 MiB/TC VMEM (and v5e's scoped limit).
    if tile_n is None:
        act_bytes = 4 * (hidden + c_out)                           # f32 activations / point
        tile_n = min(32768, max(512, (24 * 2**20) // max(act_bytes, 1)))
    per_split = -(-n_points // num_splits)
    tile_n = min(int(tile_n), ((per_split + 127) // 128) * 128)
    tile_n = max(128, (int(tile_n) // 128) * 128)

    chunk = tile_n * num_splits
    n_pad = ((n_points + chunk - 1) // chunk) * chunk
    featT = jnp.pad(featT, ((0, f_rows - n_feat), (0, n_pad - n_points)))

    # ---- Scalar-prefetched segment tables (requires sorted `batch`).
    bid = jnp.asarray(batch, jnp.int32)
    counts = jnp.bincount(bid, length=num_batches)
    offsets = jnp.concatenate(
        [jnp.zeros((1,), jnp.int32), jnp.cumsum(counts).astype(jnp.int32)])  # (B+1,)
    tiles_total = n_pad // tile_n
    tps = tiles_total // num_splits
    g0 = jnp.arange(tiles_total, dtype=jnp.int32) * tile_n
    g1 = jnp.minimum(g0 + tile_n, n_points) - 1
    lo_tbl = jnp.searchsorted(offsets, g0, side="right").astype(jnp.int32) - 1
    hi_tbl = jnp.searchsorted(offsets, g1, side="right").astype(jnp.int32) - 1
    empty = g0 >= n_points                        # fully padded tiles -> no-op masks
    lo_tbl = jnp.where(empty, 0, jnp.clip(lo_tbl, 0, num_batches - 1)).astype(jnp.int32)
    hi_tbl = jnp.where(empty, 0, jnp.clip(hi_tbl, 0, num_batches - 1)).astype(jnp.int32)

    tile_map = lambda s, i, off, lo, hi: (0, s * tps + i)
    const_map = lambda s, i, off, lo, hi: (0, 0)

    partial = pl.pallas_call(
        _sa_kernel,
        out_shape=jax.ShapeDtypeStruct((num_splits, c_out, num_batches), jnp.float32),
        grid_spec=pltpu.PrefetchScalarGridSpec(
            num_scalar_prefetch=3,
            grid=(num_splits, tps),
            in_specs=[
                # Packed point stream (lane-dense). On v7x, pipeline_mode=pl.Buffered(3)
                # on this spec is a further tuning knob.
                pl.BlockSpec((f_rows, tile_n), tile_map),
                pl.BlockSpec((hidden, f_rows), const_map),   # W1ᵀ (+b1 folded), resident
                pl.BlockSpec((c_out, hidden), const_map),    # W2ᵀ, resident
                pl.BlockSpec((c_out, 1), const_map),         # b2, resident
            ],
            out_specs=pl.BlockSpec((None, c_out, num_batches),
                                   lambda s, i, off, lo, hi: (s, 0, 0)),
        ),
        compiler_params=pltpu.CompilerParams(
            # outer axis -> TensorCore-parallel split, inner axis -> point-tile reduction
            dimension_semantics=("parallel", "arbitrary"),
            vmem_limit_bytes=48 * 2**20,
        ),
    )(offsets, lo_tbl, hi_tbl, featT, w1t, w2t, b2c)

    x1 = jnp.max(partial, axis=0).T                        # (B, c_out)
    x1 = jnp.where(jnp.isneginf(x1), 0.0, x1)              # empty-cloud fill (torch_scatter)
    pos1 = jnp.zeros((num_batches, 3), x1.dtype)
    batch1 = jnp.arange(num_batches, dtype=jnp.asarray(batch).dtype)
    return x1, pos1, batch1


if __name__ == "__main__":
    key = jax.random.PRNGKey(0)
    k_x, k_pos, k_w1, k_b1, k_w2, k_b2 = jax.random.split(key, 6)

    # Small, module-consistent shapes; N non-multiple of the tile to exercise
    # the padding / empty-segment-mask path.
    N = 136          # total points across the batch
    C_IN = 4         # per-point feature channels
    HIDDEN = 32      # mlp hidden width
    C_OUT = 32       # mlp output width
    B = 2            # number of point clouds in the batch
    IN_DIM = C_IN + 3

    x = jax.random.normal(k_x, (N, C_IN), dtype=jnp.float32)
    pos = jax.random.normal(k_pos, (N, 3), dtype=jnp.float32)
    batch = (jnp.arange(N) // (N // B)).clip(0, B - 1).astype(jnp.int32)  # sorted ids

    params = {
        "w1": jax.random.normal(k_w1, (IN_DIM, HIDDEN), dtype=jnp.float32) * 0.2,
        "b1": jax.random.normal(k_b1, (HIDDEN,), dtype=jnp.float32) * 0.1,
        "w2": jax.random.normal(k_w2, (HIDDEN, C_OUT), dtype=jnp.float32) * 0.2,
        "b2": jax.random.normal(k_b2, (C_OUT,), dtype=jnp.float32) * 0.1,
    }

    # Pure-JAX reference.
    feat_ref = jnp.concatenate([x, pos], axis=1)
    h_ref = jnp.maximum(feat_ref @ params["w1"] + params["b1"], 0.0)
    h_ref = jnp.maximum(h_ref @ params["w2"] + params["b2"], 0.0)
    x1_ref = jax.ops.segment_max(h_ref, batch, num_segments=B)

    # Run 1: f32 stream, two splits, small explicit tile -> multi-segment tile,
    # padded tile, and the split-combine path all get exercised.
    x1_a, pos1_a, batch1_a = pointnet2_global_sa(
        x, pos, batch, params, num_batches=B,
        tile_n=128, num_splits=2, compute_dtype=jnp.float32)
    jax.block_until_ready((x1_a, pos1_a, batch1_a))

    # Run 2: default bf16 stream, single split, auto tile size.
    x1_b, pos1_b, batch1_b = pointnet2_global_sa(
        x, pos, batch, params, num_batches=B, num_splits=1)
    jax.block_until_ready((x1_b, pos1_b, batch1_b))

    assert x1_a.shape == (B, C_OUT) and pos1_a.shape == (B, 3) and batch1_a.shape == (B,)
    assert x1_b.shape == (B, C_OUT)
    assert jnp.allclose(x1_a, x1_ref, atol=2e-2, rtol=2e-2)    # f32 (MXU default precision)
    assert jnp.allclose(x1_b, x1_ref, atol=7e-2, rtol=7e-2)    # bf16 point stream
    assert jnp.all(pos1_a == 0.0) and jnp.all(pos1_b == 0.0)
    assert jnp.array_equal(batch1_a, jnp.arange(B, dtype=batch.dtype))
    assert jnp.array_equal(batch1_b, jnp.arange(B, dtype=batch.dtype))

    print("KERNEL_OK")
</pallas_src>

<mosaic_0001>
module attributes {stable_mosaic.version = 11 : i64} {
  func.func @_sa_kernel(%arg0: i32, %arg1: i32, %arg2: memref<3xi32, #tpu.memory_space<smem>>, %arg3: memref<2xi32, #tpu.memory_space<smem>>, %arg4: memref<2xi32, #tpu.memory_space<smem>>, %arg5: memref<8x128xf32, #tpu.memory_space<vmem>>, %arg6: memref<32x8xf32, #tpu.memory_space<vmem>>, %arg7: memref<32x32xf32, #tpu.memory_space<vmem>>, %arg8: memref<32x1xf32, #tpu.memory_space<vmem>>, %arg9: memref<1x32x2xf32, #tpu.memory_space<vmem>>) attributes {dimension_semantics = [#tpu.dimension_semantics<parallel>, #tpu.dimension_semantics<arbitrary>], iteration_bounds = array<i64: 2, 1>, scalar_prefetch = 3 : i64, scratch_operands = 0 : i64, tpu.core_type = #tpu.core_type<tc>, window_params = [{transform_indices = @transform_0, window_bounds = array<i64: 8, 128>}, {pipeline_mode = #tpu.pipeline_mode<synchronous>, transform_indices = @transform_1, window_bounds = array<i64: 32, 8>}, {pipeline_mode = #tpu.pipeline_mode<synchronous>, transform_indices = @transform_2, window_bounds = array<i64: 32, 32>}, {pipeline_mode = #tpu.pipeline_mode<synchronous>, transform_indices = @transform_3, window_bounds = array<i64: 32, 1>}, {transform_indices = @transform_4, window_bounds = array<i64: 1, 32, 2>}]} {
    %c1_i32 = arith.constant 1 : i32
    %0 = arith.muli %arg0, %c1_i32 : i32
    %1 = arith.addi %0, %arg1 : i32
    %c0_i32 = arith.constant 0 : i32
    %2 = arith.cmpi eq, %arg1, %c0_i32 : i32
    %3 = arith.extui %2 : i1 to i32
    %c0_i32_0 = arith.constant 0 : i32
    %4 = arith.cmpi ne, %3, %c0_i32_0 : i32
    scf.if %4 {
      %cst_26 = arith.constant 0xFF800000 : f32
      %77 = vector.broadcast %cst_26 : f32 to vector<32x2xf32>
      %c0_27 = arith.constant 0 : index
      %c0_28 = arith.constant 0 : index
      %c0_29 = arith.constant 0 : index
      %78 = vector.load %arg9[%c0_27, %c0_28, %c0_29] : memref<1x32x2xf32, #tpu.memory_space<vmem>>, vector<1x32x2xf32>
      %79 = vector.shape_cast %78 : vector<1x32x2xf32> to vector<32x2xf32>
      %80 = vector.shape_cast %77 : vector<32x2xf32> to vector<1x32x2xf32>
      tpu.vector_store %arg9[%c0_27, %c0_28, %c0_29], %80 {strides = array<i32>} : memref<1x32x2xf32, #tpu.memory_space<vmem>>, vector<1x32x2xf32>,
    } else {
    }
    %c0 = arith.constant 0 : index
    %c0_1 = arith.constant 0 : index
    %5 = vector.load %arg6[%c0, %c0_1] : memref<32x8xf32, #tpu.memory_space<vmem>>, vector<32x8xf32>
    %c0_2 = arith.constant 0 : index
    %c0_3 = arith.constant 0 : index
    %6 = vector.load %arg5[%c0_2, %c0_3] : memref<8x128xf32, #tpu.memory_space<vmem>>, vector<8x128xf32>
    %cst = arith.constant dense<0.000000e+00> : vector<32x128xf32>
    %7 = tpu.matmul %5, %6, %cst {dimension_numbers = #tpu.dot_dimension_numbers<[1], [0], [0], [1], [0, 0, 1, 1], [], []>} : vector<32x8xf32>, vector<8x128xf32>, vector<32x128xf32> -> vector<32x128xf32>
    %cst_4 = arith.constant 0.000000e+00 : f32
    %8 = vector.broadcast %cst_4 : f32 to vector<32x128xf32>
    %9 = arith.maximumf %7, %8 : vector<32x128xf32>
    %c0_5 = arith.constant 0 : index
    %c0_6 = arith.constant 0 : index
    %10 = vector.load %arg7[%c0_5, %c0_6] : memref<32x32xf32, #tpu.memory_space<vmem>>, vector<32x32xf32>
    %cst_7 = arith.constant dense<0.000000e+00> : vector<32x128xf32>
    %11 = tpu.matmul %10, %9, %cst_7 {dimension_numbers = #tpu.dot_dimension_numbers<[1], [0], [0], [1], [0, 0, 1, 1], [], []>} : vector<32x32xf32>, vector<32x128xf32>, vector<32x128xf32> -> vector<32x128xf32>
    %c0_8 = arith.constant 0 : index
    %c0_9 = arith.constant 0 : index
    %12 = vector.load %arg8[%c0_8, %c0_9] : memref<32x1xf32, #tpu.memory_space<vmem>>, vector<32x1xf32>
    %13 = vector.broadcast %12 : vector<32x1xf32> to vector<32x128xf32>
    %14 = arith.addf %11, %13 : vector<32x128xf32>
    %cst_10 = arith.constant 0.000000e+00 : f32
    %15 = vector.broadcast %cst_10 : f32 to vector<32x128xf32>
    %16 = arith.maximumf %14, %15 : vector<32x128xf32>
    %c128_i32 = arith.constant 128 : i32
    %17 = arith.muli %1, %c128_i32 : i32
    %18 = tpu.iota {dimensions = array<i32: 1>} : vector<1x128xi32>
    %19 = vector.broadcast %17 : i32 to vector<1x128xi32>
    %20 = arith.addi %19, %18 : vector<1x128xi32>
    %21 = tpu.iota {dimensions = array<i32: 1>} : vector<32x2xi32>
    %22 = arith.index_cast %1 : i32 to index
    %23 = memref.load %arg3[%22] : memref<2xi32, #tpu.memory_space<smem>>
    %24 = arith.index_cast %1 : i32 to index
    %25 = memref.load %arg4[%24] : memref<2xi32, #tpu.memory_space<smem>>
    %c0_11 = arith.constant 0 : index
    %c0_12 = arith.constant 0 : index
    %c0_13 = arith.constant 0 : index
    %26 = vector.load %arg9[%c0_11, %c0_12, %c0_13] : memref<1x32x2xf32, #tpu.memory_space<vmem>>, vector<1x32x2xf32>
    %27 = vector.shape_cast %26 : vector<1x32x2xf32> to vector<32x2xf32>
    %28 = arith.index_cast %23 : i32 to index
    %29 = memref.load %arg2[%28] : memref<3xi32, #tpu.memory_space<smem>>
    %30 = vector.broadcast %29 : i32 to vector<1x128xi32>
    %31 = arith.cmpi sge, %20, %30 : vector<1x128xi32>
    %c1_i32_14 = arith.constant 1 : i32
    %32 = arith.addi %23, %c1_i32_14 : i32
    %33 = arith.index_cast %32 : i32 to index
    %34 = memref.load %arg2[%33] : memref<3xi32, #tpu.memory_space<smem>>
    %35 = vector.broadcast %34 : i32 to vector<1x128xi32>
    %36 = arith.cmpi slt, %20, %35 : vector<1x128xi32>
    %37 = arith.andi %31, %36 : vector<1x128xi1>
    %cst_15 = arith.constant 0xFF800000 : f32
    %38 = vector.shape_cast %37 : vector<1x128xi1> to vector<1x128xi1>
    %39 = vector.broadcast %38 : vector<1x128xi1> to vector<32x128xi1>
    %40 = vector.broadcast %cst_15 : f32 to vector<32x128xf32>
    %41 = arith.select %39, %16, %40 : vector<32x128xi1>, vector<32x128xf32>
    %cst_16 = arith.constant dense<0xFF800000> : vector<32xf32>
    %42 = vector.multi_reduction <maximumf>, %41, %cst_16 [1] : vector<32x128xf32> to vector<32xf32>
    %43 = vector.shape_cast %42 : vector<32xf32> to vector<32x1xf32>
    %44 = vector.broadcast %23 : i32 to vector<32x2xi32>
    %45 = arith.cmpi eq, %21, %44 : vector<32x2xi32>
    %46 = vector.broadcast %43 : vector<32x1xf32> to vector<32x2xf32>
    %47 = arith.maximumf %27, %46 : vector<32x2xf32>
    %48 = arith.select %45, %47, %27 : vector<32x2xi1>, vector<32x2xf32>
    %49 = arith.index_cast %25 : i32 to index
    %50 = memref.load %arg2[%49] : memref<3xi32, #tpu.memory_space<smem>>
    %51 = vector.broadcast %50 : i32 to vector<1x128xi32>
    %52 = arith.cmpi sge, %20, %51 : vector<1x128xi32>
    %c1_i32_17 = arith.constant 1 : i32
    %53 = arith.addi %25, %c1_i32_17 : i32
    %54 = arith.index_cast %53 : i32 to index
    %55 = memref.load %arg2[%54] : memref<3xi32, #tpu.memory_space<smem>>
    %56 = vector.broadcast %55 : i32 to vector<1x128xi32>
    %57 = arith.cmpi slt, %20, %56 : vector<1x128xi32>
    %58 = arith.andi %52, %57 : vector<1x128xi1>
    %cst_18 = arith.constant 0xFF800000 : f32
    %59 = vector.shape_cast %58 : vector<1x128xi1> to vector<1x128xi1>
    %60 = vector.broadcast %59 : vector<1x128xi1> to vector<32x128xi1>
    %61 = vector.broadcast %cst_18 : f32 to vector<32x128xf32>
    %62 = arith.select %60, %16, %61 : vector<32x128xi1>, vector<32x128xf32>
    %cst_19 = arith.constant dense<0xFF800000> : vector<32xf32>
    %63 = vector.multi_reduction <maximumf>, %62, %cst_19 [1] : vector<32x128xf32> to vector<32xf32>
    %64 = vector.shape_cast %63 : vector<32xf32> to vector<32x1xf32>
    %65 = vector.broadcast %25 : i32 to vector<32x2xi32>
    %66 = arith.cmpi eq, %21, %65 : vector<32x2xi32>
    %67 = vector.broadcast %64 : vector<32x1xf32> to vector<32x2xf32>
    %68 = arith.maximumf %48, %67 : vector<32x2xf32>
    %69 = arith.select %66, %68, %48 : vector<32x2xi1>, vector<32x2xf32>
    %c1_i32_20 = arith.constant 1 : i32
    %70 = arith.addi %23, %c1_i32_20 : i32
    %cst_21 = arith.constant 0xFF800000 : f32
    %71 = arith.subi %25, %70 : i32
    %72 = arith.addi %70, %71 : i32
    %c1_i32_22 = arith.constant 1 : i32
    %73 = scf.for %arg10 = %70 to %72 step %c1_i32_22 iter_args(%arg11 = %69) -> (vector<32x2xf32>)  : i32 {
      %77 = arith.index_cast %arg10 : i32 to index
      %78 = memref.load %arg2[%77] : memref<3xi32, #tpu.memory_space<smem>>
      %79 = vector.broadcast %78 : i32 to vector<1x128xi32>
      %80 = arith.cmpi sge, %20, %79 : vector<1x128xi32>
      %c1_i32_26 = arith.constant 1 : i32
      %81 = arith.addi %arg10, %c1_i32_26 : i32
      %82 = arith.index_cast %81 : i32 to index
      %83 = memref.load %arg2[%82] : memref<3xi32, #tpu.memory_space<smem>>
      %84 = vector.broadcast %83 : i32 to vector<1x128xi32>
      %85 = arith.cmpi slt, %20, %84 : vector<1x128xi32>
      %86 = arith.andi %80, %85 : vector<1x128xi1>
      %87 = vector.shape_cast %86 : vector<1x128xi1> to vector<1x128xi1>
      %88 = vector.broadcast %87 : vector<1x128xi1> to vector<32x128xi1>
      %89 = vector.broadcast %cst_21 : f32 to vector<32x128xf32>
      %90 = arith.select %88, %16, %89 : vector<32x128xi1>, vector<32x128xf32>
      %cst_27 = arith.constant dense<0xFF800000> : vector<32xf32>
      %91 = vector.multi_reduction <maximumf>, %90, %cst_27 [1] : vector<32x128xf32> to vector<32xf32>
      %92 = vector.shape_cast %91 : vector<32xf32> to vector<32x1xf32>
      %93 = vector.broadcast %arg10 : i32 to vector<32x2xi32>
      %94 = arith.cmpi eq, %21, %93 : vector<32x2xi32>
      %95 = vector.broadcast %92 : vector<32x1xf32> to vector<32x2xf32>
      %96 = arith.maximumf %arg11, %95 : vector<32x2xf32>
      %97 = arith.select %94, %96, %arg11 : vector<32x2xi1>, vector<32x2xf32>
      scf.yield %97 : vector<32x2xf32>
    }
    %c0_23 = arith.constant 0 : index
    %c0_24 = arith.constant 0 : index
    %c0_25 = arith.constant 0 : index
    %74 = vector.load %arg9[%c0_23, %c0_24, %c0_25] : memref<1x32x2xf32, #tpu.memory_space<vmem>>, vector<1x32x2xf32>
    %75 = vector.shape_cast %74 : vector<1x32x2xf32> to vector<32x2xf32>
    %76 = vector.shape_cast %73 : vector<32x2xf32> to vector<1x32x2xf32>
    tpu.vector_store %arg9[%c0_23, %c0_24, %c0_25], %76 {strides = array<i32>} : memref<1x32x2xf32, #tpu.memory_space<vmem>>, vector<1x32x2xf32>,
    return
  }
  func.func @transform_0(%arg0: i32, %arg1: i32, %arg2: memref<3xi32, #tpu.memory_space<smem>>, %arg3: memref<2xi32, #tpu.memory_space<smem>>, %arg4: memref<2xi32, #tpu.memory_space<smem>>) -> (i32, i32) {
    %c1_i32 = arith.constant 1 : i32
    %0 = arith.muli %arg0, %c1_i32 : i32
    %1 = arith.addi %0, %arg1 : i32
    %c0_i32 = arith.constant 0 : i32
    %c0_i32_0 = arith.constant 0 : i32
    return %c0_i32, %1 : i32, i32
  }
  func.func @transform_1(%arg0: i32, %arg1: i32, %arg2: memref<3xi32, #tpu.memory_space<smem>>, %arg3: memref<2xi32, #tpu.memory_space<smem>>, %arg4: memref<2xi32, #tpu.memory_space<smem>>) -> (i32, i32) {
    %c0_i32 = arith.constant 0 : i32
    %c0_i32_0 = arith.constant 0 : i32
    %c0_i32_1 = arith.constant 0 : i32
    return %c0_i32, %c0_i32_0 : i32, i32
  }
  func.func @transform_2(%arg0: i32, %arg1: i32, %arg2: memref<3xi32, #tpu.memory_space<smem>>, %arg3: memref<2xi32, #tpu.memory_space<smem>>, %arg4: memref<2xi32, #tpu.memory_space<smem>>) -> (i32, i32) {
    %c0_i32 = arith.constant 0 : i32
    %c0_i32_0 = arith.constant 0 : i32
    %c0_i32_1 = arith.constant 0 : i32
    return %c0_i32, %c0_i32_0 : i32, i32
  }
  func.func @transform_3(%arg0: i32, %arg1: i32, %arg2: memref<3xi32, #tpu.memory_space<smem>>, %arg3: memref<2xi32, #tpu.memory_space<smem>>, %arg4: memref<2xi32, #tpu.memory_space<smem>>) -> (i32, i32) {
    %c0_i32 = arith.constant 0 : i32
    %c0_i32_0 = arith.constant 0 : i32
    %c0_i32_1 = arith.constant 0 : i32
    return %c0_i32, %c0_i32_0 : i32, i32
  }
  func.func @transform_4(%arg0: i32, %arg1: i32, %arg2: memref<3xi32, #tpu.memory_space<smem>>, %arg3: memref<2xi32, #tpu.memory_space<smem>>, %arg4: memref<2xi32, #tpu.memory_space<smem>>) -> (i32, i32, i32) {
    %c0_i32 = arith.constant 0 : i32
    %c0_i32_0 = arith.constant 0 : i32
    %c0_i32_1 = arith.constant 0 : i32
    return %arg0, %c0_i32, %c0_i32_0 : i32, i32, i32
  }
}

</mosaic_0001>

<bundles_post_ra>
// kernel: tpu_custom_call.1
= control target key start
LH: loop header
LB: loop body
LE: loop exit
PB: predicated region body
PF: predicated region fallthrough
CT: control target
= control target key end

     0   :  { %s834_s30 = smov [#allocation3]   ;;  %s835_s8 = smov [#allocation4]   ;;  %s1083_s0 = inlined_call_operand.vmem [shape: s32[3], index: 0, kind: input, shape index: {}]   ;;  %s1084_s3 = inlined_call_operand.vmem [shape: f32[8,256], index: 3, kind: input, shape index: {}]   ;;  %s1085_s4 = inlined_call_operand.vmem [shape: f32[32,8], index: 4, kind: input, shape index: {}]   ;;  %s1086_s5 = inlined_call_operand.vmem [shape: f32[32,32], index: 5, kind: input, shape index: {}]   ;;  %s1087_s6 = inlined_call_operand.vmem [shape: f32[32,1], index: 6, kind: input, shape index: {}]   ;;  %s1088_s7 = inlined_call_operand.vmem [shape: f32[2,32,2], index: 7, kind: output, shape index: {}]   ;;  %s1089_s1 = inlined_call_operand.vmem [shape: s32[2], index: 1, kind: input, shape index: {}]   ;;  %s1090_s2 = inlined_call_operand.vmem [shape: s32[2], index: 2, kind: input, shape index: {}]  }
   0x1   :  { %s13_s26 = sshll.u32 %s1083_s0, 4  ;;  %s18_s29 = sshll.u32 %s1089_s1, 4  ;;  %s14_s26 = int_to_ptr.vmem [resolvable:$true] %s13_s26  ;;  %s19_s29 = int_to_ptr.vmem [resolvable:$true] %s18_s29 }
   0x2   :  { %16 = dma.vmem_to_smem %s14_s26, 16, %s834_s30, [#allocation2] }
   0x3   :  { %21 = dma.vmem_to_smem %s19_s29, 16, %s835_s8, [#allocation2] }
   0x4   :  { %s23_s11 = sshll.u32 %s1090_s2, 4  ;;  %s836_s12 = smov [#allocation5]   ;;  %s24_s11 = int_to_ptr.vmem [resolvable:$true] %s23_s11 }
   0x5   :  { %26 = dma.vmem_to_smem %s24_s11, 16, %s836_s12, [#allocation2] }
   0x6   :  { %784 = dma.done.wait [#allocation2], 48 }
   0x7   :  { %785 = vsyncadd [#allocation2], 4294967248 }
   0x8   :  { %29 = sfence }
   0x9   :  { %s888_s0 = smov 0   ;;  %s890_s13 = smov 0  }
   0xa   :  { %s892_s1 = smov 0  }
   0xb LB: > { %s47_s2 = sadd.s32 1, %s792_s13  ;;  %p576_p0 = scmp.ge.s32.totalorder %s796_s1, 1  ;;  %s796_s1 = sphi %s892_s1, %s35_s1   ;;  %s792_s13 = sphi %s890_s13, %s1099_s13   ;;  %s788_s0 = sphi %s888_s0, %s1098_s0  }
   0xc   : > { %p49_p1 = scmp.ge.s32.totalorder %s47_s2, 2  ;;  %p198_p2 = scmp.lt.s32.totalorder %s796_s1, 3 }
   0xe   : > { %s1101_s2 = smov (%p49_p1, %s47_s2), 0  ;;  %p199_p3 = pnand %p576_p0, %p198_p2 }
   0xf   : > { %p225_p4 = scmp.lt.s32.totalorder (!%p199_p3), %s788_s0, 1  ;;  %s963_s26 = sld [smem:[#allocation4 + %s788_s0]] (!%p199_p3) }
  0x10   : > { %202 = sbr.rel (%p199_p3) target bundleno = 619 (0x26b), region = 36  ;;  %s588_s30 = sshll.u32 (!%p199_p3), %s788_s0, 7 }
  0x11   : > { %s974_s8 = sld [smem:[#allocation5 + %s788_s0]] (!%p199_p3) }
  0x15   : > { %s226_s14 = scalar_select %p225_p4, %s788_s0, 1  ;;  %vm240_vm0 = vcmask 15360   ;;  %v246_v0 = vld [vmem:[%s1085_s4 + $0x8] sm:$0xff]  ;;  %vm250_vm1 = vcmask 64512   ;;  %v245_v1 = vld [vmem:[%s1085_s4] sm:$0xff]  ;;  %v837_v2 = vmov -inf   ;;  %v371_v23 = vlaneseq }
  0x16   : > { %v247_v4 = vld [vmem:[%s1085_s4 + $0x10] sm:$0xff]  ;;  %v248_v5 = vld [vmem:[%s1085_s4 + $0x18] sm:$0xff]  ;;  %v300_v6 = vld [vmem:[%s1087_s6] sm:$0xff]  ;;  %v838_v7 = vmov 0   ;;  %vm324_vm2 = vcmask 261120   ;;  %s966_s27 = sadd.s32 1, %s963_s26   ;;  %v373_v25 = vstv %s588_s30 }
  0x17   : > { %s577_s15 = sshll.u32 %s226_s14, 3  ;;  %s591_s16 = sshll.u32 %s226_s14, 5  ;;  %698 = vset.pattern.permute.xlu0 %v838_v7  ;;  %699 = vset.pattern.permute.xlu1 %v838_v7  ;;  %v301_v9 = vld [vmem:[%s1087_s6 + $0x8] sm:$0xff]  ;;  %v302_v10 = vld [vmem:[%s1087_s6 + $0x10] sm:$0xff]  ;;  %v303_v12 = vld [vmem:[%s1087_s6 + $0x18] sm:$0xff]  ;;  %v971_v24 = vand.u32 127, %v371_v23  ;;  %v403_v59 = vstv %s963_s26 }
  0x18   : > { %s228_s19 = scalar_lea.vmem %s1084_s3, %s577_s15  ;;  %s916_s22 = scalar_lea.vmem %s1088_s7, %s591_s16  ;;  %306 = vperm.xlu0 %698, %v300_v6   ;;  %316 = vperm.xlu1 %699, %v302_v10   ;;  %v296_v19 = vld [vmem:[%s1086_s5] sm:$0xff]  ;;  %v298_v20 = vld [vmem:[%s1086_s5 + $0x10] sm:$0xff]  ;;  %v297_v21 = vld [vmem:[%s1086_s5 + $0x8] sm:$0xff]  ;;  %v435_v62 = vstv %s974_s8 }
  0x19   : > { %241 = vst.msk [vmem:[%s916_s22] sm:$0xff] %vm240_vm0, %v837_v2  ;;  %v249_v3 = vld [vmem:[%s228_s19] sm:$0xff]  ;;  %v299_v22 = vld [vmem:[%s1086_s5 + $0x18] sm:$0xff]  ;;  %s381_s28 = sld [smem:[#allocation3 + %s963_s26]]  ;;  %v977_v26 = vadd.s32 %v373_v25, %v971_v24  ;;  %s416_s9 = sadd.s32 1, %s974_s8  ;;  %vm1016_vm9 = vcmp.eq.s32.totalorder %v971_v24, %v403_v59  ;;  %vm1024_vm10 = vcmp.eq.s32.totalorder %v971_v24, %v435_v62 }
  0x1a   : > { %242 = vst.msk [vmem:[%s916_s22 + $0x8] sm:$0xff] %vm240_vm0, %v837_v2  ;;  %592 = vmatpush.msra.mxu3 %v249_v3  ;;  %278 = vmatpush.msra.mxu0 %v249_v3  ;;  %s385_s29 = sld [smem:[#allocation3 + %s966_s27]]  ;;  %p528_p5 = scmp.ge.s32.totalorder %s966_s27, %s974_s8 }
  0x1b   : > { %243 = vst.msk [vmem:[%s916_s22 + $0x10] sm:$0xff] %vm240_vm0, %v837_v2  ;;  %581 = vmatmul.msk.f32.vlgmr.msra.gmra.mxu3 %vm250_vm1, %v246_v0  ;;  %580 = vmatmul.msk.f32.vlgmr.msra.gmra.mxu0 %vm250_vm1, %v245_v1  ;;  %s413_s0 = sld [smem:[#allocation3 + %s974_s8]] }
  0x1c   : > { %244 = vst.msk [vmem:[%s916_s22 + $0x18] sm:$0xff] %vm240_vm0, %v837_v2  ;;  %s417_s10 = sld [smem:[#allocation3 + %s416_s9]] }
  0x1f   : > { %v382_v27 = vstv %s381_s28 }
  0x20   : > { %311 = vperm.xlu0 %698, %v301_v9   ;;  %321 = vperm.xlu1 %699, %v303_v12   ;;  %v386_v28 = vstv %s385_s29  ;;  %vm383_vm3 = vcmp.ge.s32.totalorder %v977_v26, %v382_v27  ;;  %v377_v58 = vld [vmem:[%s916_s22] sm:$0xff] }
  0x21   : > { %vm387_vm4 = vcmp.lt.s32.totalorder %v977_v26, %v386_v28  ;;  %v414_v44 = vstv %s413_s0  ;;  %v378_v2 = vld [vmem:[%s916_s22 + $0x8] sm:$0xff] }
  0x22   : > { %vm982_vm5 = vmand %vm383_vm3, %vm387_vm4  ;;  %v418_v45 = vstv %s417_s10  ;;  %vm415_vm6 = vcmp.ge.s32.totalorder %v977_v26, %v414_v44  ;;  %v379_v6 = vld [vmem:[%s916_s22 + $0x10] sm:$0xff] }
  0x23   : > { %582 = vmatmul.msk.f32.gmra.mxu3 %vm250_vm1, %v247_v4  ;;  %vm419_vm7 = vcmp.lt.s32.totalorder %v977_v26, %v418_v45 }
  0x24   : > { %vm420_vm8 = vmand %vm415_vm6, %vm419_vm7 }
  0x2b   : > { %583 = vmatmul.msk.f32.gmra.mxu3 %vm250_vm1, %v248_v5 }
  0x8a   : > { %v307_v29 = vpop.permute.xlu0 %306  ;;  %v317_v33 = vpop.permute.xlu1 %316 }
  0x92   : > { %v312_v38 = vpop.permute.xlu0 %311  ;;  %v322_v46 = vpop.permute.xlu1 %321 }
  0x98   : > { %v280_v15 = vpop.f32.mrf.mxu0 }
  0x99   : > { %v292_v18 = vmax.f32 %v280_v15, 0.0  ;;  %v380_v15 = vld [vmem:[%s916_s22 + $0x18] sm:$0xff] }
  0x9e   : > { %v283_v8 = vpop.f32.mrf.mxu3 }
  0x9f   : > { %v293_v17 = vmax.f32 %v283_v8, 0.0 }
  0xa6   : > { %v286_v11 = vpop.f32.mrf.mxu3 }
  0xa7   : > { %v294_v16 = vmax.f32 %v286_v11, 0.0 }
  0xae   : > { %v289_v13 = vpop.f32.mrf.mxu3 }
  0xaf   : > { %v295_v14 = vmax.f32 %v289_v13, 0.0 }
  0xb1   : > { %349 = vmatpush.msra.mxu1 %v295_v14  ;;  %593 = vmatpush.msra.mxu2 %v295_v14 }
  0xb3   : > { %350 = vmatpush.msra.mxu1 %v294_v16  ;;  %594 = vmatpush.msra.mxu2 %v294_v16 }
  0xb5   : > { %351 = vmatpush.msra.mxu1 %v293_v17  ;;  %595 = vmatpush.msra.mxu2 %v293_v17 }
  0xb7   : > { %352 = vmatpush.msra.mxu1 %v292_v18  ;;  %596 = vmatpush.msra.mxu2 %v292_v18 }
  0xb8   : > { %584 = vmatmul.msk.f32.vlgmr.msra.gmra.mxu1 %vm324_vm2, %v296_v19  ;;  %586 = vmatmul.msk.f32.vlgmr.msra.gmra.mxu2 %vm324_vm2, %v298_v20 }
  0xc0   : > { %585 = vmatmul.msk.f32.gmra.mxu1 %vm324_vm2, %v297_v21  ;;  %587 = vmatmul.msk.f32.gmra.mxu2 %vm324_vm2, %v299_v22 }
 0x135   : > { %v354_v30 = vpop.f32.mrf.mxu1 }
 0x136   : > { %v355_v31 = vadd.f32 %v354_v30, %v307_v29 }
 0x138   : > { %v986_v34 = vmax.f32 %v355_v31, 0.0 }
 0x13a   : > { %v391_v35 = vsel %vm982_vm5, %v986_v34, -inf  ;;  %v423_v52 = vsel %vm420_vm8, %v986_v34, -inf }
 0x13b   : > { %395 = vmax.xlane.f32.xlu2 %v391_v35  ;;  %v360_v36 = vpop.f32.mrf.mxu2 }
 0x13c   : > { %v361_v37 = vadd.f32 %v360_v36, %v317_v33 }
 0x13d   : > { %v357_v39 = vpop.f32.mrf.mxu1 }
 0x13e   : > { %v358_v40 = vadd.f32 %v357_v39, %v312_v38  ;;  %v992_v41 = vmax.f32 %v361_v37, 0.0 }
 0x140   : > { %v994_v42 = vmax.f32 %v358_v40, 0.0  ;;  %v393_v43 = vsel %vm982_vm5, %v992_v41, -inf  ;;  %v425_v54 = vsel %vm420_vm8, %v992_v41, -inf }
 0x141   : > { %399 = vmax.xlane.f32.xlu0 %v393_v43 }
 0x142   : > { %v392_v47 = vsel %vm982_vm5, %v994_v42, -inf  ;;  %v424_v53 = vsel %vm420_vm8, %v994_v42, -inf }
 0x143   : > { %397 = vmax.xlane.f32.xlu2 %v392_v47  ;;  %v363_v48 = vpop.f32.mrf.mxu2 }
 0x144   : > { %v364_v49 = vadd.f32 %v363_v48, %v322_v46 }
 0x146   : > { %v1004_v50 = vmax.f32 %v364_v49, 0.0 }
 0x148   : > { %v394_v51 = vsel %vm982_vm5, %v1004_v50, -inf  ;;  %v426_v55 = vsel %vm420_vm8, %v1004_v50, -inf }
 0x149   : > { %401 = vmax.xlane.f32.xlu1 %v394_v51 }
 0x14b   : > { %427 = vmax.xlane.f32.xlu2 %v423_v52 }
 0x153   : > { %429 = vmax.xlane.f32.xlu2 %v424_v53 }
 0x15b   : > { %431 = vmax.xlane.f32.xlu2 %v425_v54 }
 0x163   : > { %433 = vmax.xlane.f32.xlu2 %v426_v55 }
 0x1ae   : > { %v396_v56 = vpop.xlane.xlu2 %395 }
 0x1af   : > { %v405_v60 = vmax.f32 %v377_v58, %v396_v56 }
 0x1b1   : > { %v409_v63 = vsel %vm1016_vm9, %v405_v60, %v377_v58 }
 0x1b4   : > { %v400_v7 = vpop.xlane.xlu0 %399 }
 0x1b5   : > { %v407_v11 = vmax.f32 %v379_v6, %v400_v7 }
 0x1b6   : > { %v398_v57 = vpop.xlane.xlu2 %397 }
 0x1b7   : > { %v406_v5 = vmax.f32 %v378_v2, %v398_v57  ;;  %v411_v13 = vsel %vm1016_vm9, %v407_v11, %v379_v6 }
 0x1b9   : > { %v410_v8 = vsel %vm1016_vm9, %v406_v5, %v378_v2 }
 0x1bc   : > { %v402_v16 = vpop.xlane.xlu1 %401 }
 0x1bd   : > { %v408_v19 = vmax.f32 %v380_v15, %v402_v16 }
 0x1be   : > { %v428_v1 = vpop.xlane.xlu2 %427 }
 0x1bf   : > { %v437_v3 = vmax.f32 %v409_v63, %v428_v1  ;;  %v412_v20 = vsel %vm1016_vm9, %v408_v19, %v380_v15 }
 0x1c1   : > { %v441_v4 = vsel %vm1024_vm10, %v437_v3, %v409_v63  }
 0x1c2   : > { %v830_v29 = vmov %v441_v4  }
 0x1c6   : > { %v430_v9 = vpop.xlane.xlu2 %429 }
 0x1c7   : > { %v438_v10 = vmax.f32 %v410_v8, %v430_v9 }
 0x1c9   : > { %v442_v12 = vsel %vm1024_vm10, %v438_v10, %v410_v8  }
 0x1ca   : > { %v826_v28 = vmov %v442_v12  }
 0x1ce   : > { %v432_v14 = vpop.xlane.xlu2 %431 }
 0x1cf   : > { %v439_v17 = vmax.f32 %v411_v13, %v432_v14 }
 0x1d1   : > { %v443_v18 = vsel %vm1024_vm10, %v439_v17, %v411_v13  }
 0x1d2   : > { %v822_v27 = vmov %v443_v18  }
 0x1d6   : > { %v434_v21 = vpop.xlane.xlu2 %433  ;;  %533 = sbr.rel (%p528_p5) target bundleno = 615 (0x267), region = 71 }
 0x1d7   : > { %v440_v22 = vmax.f32 %v412_v20, %v434_v21 }
 0x1d9   : > { %v444_v23 = vsel %vm1024_vm10, %v440_v22, %v412_v20  }
 0x1da   : > { %v818_v25 = vmov %v444_v23  }
 0x1db   : > { %v798_v30 = vmov %v444_v23   ;;  %v802_v31 = vmov %v443_v18   ;;  %v806_v32 = vmov %v442_v12   ;;  %v810_v33 = vmov %v441_v4  }
 0x1dc LB: >> { %s455_s11 = sld [smem:[#allocation3 + %s816_s27]]  ;;  %s1051_s12 = sadd.s32 1, %s816_s27   ;;  %v477_v43 = vstv %s816_s27  ;;  %s816_s27 = sphi %s966_s27, %s1097_s27   ;;  %v812_v33 = vphi %v810_v33, %v811_v33   ;;  %v808_v32 = vphi %v806_v32, %v807_v32   ;;  %v804_v31 = vphi %v802_v31, %v803_v31   ;;  %v800_v30 = vphi %v798_v30, %v799_v30  }
 0x1dd   : >> { %s459_s14 = sld [smem:[#allocation3 + %s1051_s12]]  ;;  %vm478_vm14 = vcmp.eq.s32.totalorder %v971_v24, %v477_v43  ;;  %p447_p6 = scmp.ge.s32.totalorder %s1051_s12, %s974_s8 }
 0x1de   : >> { %s1097_s27 = smov %s1051_s12 }
 0x1e2   : >> { %v456_v35 = vstv %s455_s11 }
 0x1e3   : >> { %vm457_vm11 = vcmp.ge.s32.totalorder %v977_v26, %v456_v35  ;;  %v460_v36 = vstv %s459_s14 }
 0x1e4   : >> { %vm461_vm12 = vcmp.lt.s32.totalorder %v977_v26, %v460_v36 }
 0x1e5   : >> { %vm462_vm13 = vmand %vm457_vm11, %vm461_vm12 }
 0x1e6   : >> { %v467_v37 = vsel %vm462_vm13, %v992_v41, -inf  ;;  %v465_v38 = vsel %vm462_vm13, %v986_v34, -inf  ;;  %v468_v39 = vsel %vm462_vm13, %v1004_v50, -inf  ;;  %v466_v40 = vsel %vm462_vm13, %v994_v42, -inf }
 0x1e7   : >> { %473 = vmax.xlane.f32.xlu1 %v467_v37  ;;  %469 = vmax.xlane.f32.xlu0 %v465_v38 }
 0x1ef   : >> { %475 = vmax.xlane.f32.xlu1 %v468_v39  ;;  %471 = vmax.xlane.f32.xlu0 %v466_v40 }
 0x25a   : >> { %v474_v44 = vpop.xlane.xlu1 %473  ;;  %v470_v45 = vpop.xlane.xlu0 %469 }
 0x25b   : >> { %v481_v46 = vmax.f32 %v804_v31, %v474_v44  ;;  %v479_v47 = vmax.f32 %v812_v33, %v470_v45 }
 0x25d   : >> { %v485_v48 = vsel %vm478_vm14, %v481_v46, %v804_v31   ;;  %v483_v49 = vsel %vm478_vm14, %v479_v47, %v812_v33  }
 0x25e   : >> { %v803_v31 = vmov %v485_v48   ;;  %v811_v33 = vmov %v483_v49   ;;  %v823_v27 = vmov (%p447_p6), %v485_v48   ;;  %v831_v29 = vmov (%p447_p6), %v483_v49  }
 0x262   : >> { %v476_v51 = vpop.xlane.xlu1 %475  ;;  %v472_v52 = vpop.xlane.xlu0 %471  ;;  %450 = sbr.rel (!%p447_p6) target bundleno = 476 (0x1dc), region = 77 }
 0x263   : >> { %v482_v53 = vmax.f32 %v800_v30, %v476_v51  ;;  %v480_v54 = vmax.f32 %v808_v32, %v472_v52 }
 0x265   : >> { %v486_v55 = vsel %vm478_vm14, %v482_v53, %v800_v30   ;;  %v484_v56 = vsel %vm478_vm14, %v480_v54, %v808_v32  }
 0x266   : >> { %v799_v30 = vmov %v486_v55   ;;  %v807_v32 = vmov %v484_v56   ;;  %v819_v25 = vmov (%p447_p6), %v486_v55   ;;  %v827_v28 = vmov (%p447_p6), %v484_v56  }
 0x267 PF: > { %488 = vst.msk [vmem:[%s916_s22] sm:$0xff] %vm240_vm0, %v832_v29  ;;  %v832_v29 = vphi %v830_v29, %v831_v29   ;;  %v828_v28 = vphi %v826_v28, %v827_v28   ;;  %v824_v27 = vphi %v822_v27, %v823_v27   ;;  %v820_v25 = vphi %v818_v25, %v819_v25  }
 0x268   : > { %489 = vst.msk [vmem:[%s916_s22 + $0x8] sm:$0xff] %vm240_vm0, %v828_v28 }
 0x269   : > { %490 = vst.msk [vmem:[%s916_s22 + $0x10] sm:$0xff] %vm240_vm0, %v824_v27 }
 0x26a   : > { %491 = vst.msk [vmem:[%s916_s22 + $0x18] sm:$0xff] %vm240_vm0, %v820_v25 }
 0x26b PF: > { %s35_s1 = sadd.s32 1, %s796_s1   ;;  %s1098_s0 = smov %s792_s13 }
 0x26c   : > { %p32_p7 = scmp.ge.s32.totalorder %s35_s1, 4   ;;  %s1099_s13 = smov %s1101_s2 }
 0x26e   :  { %34 = sbr.rel (!%p32_p7) target bundleno = 11 (0xb), region = 88 }

</bundles_post_ra>
